<compile_context>
chip_gen: v5e
topology: v5e:2x2
jax: 0.10.0
libtpu: 0.0.40
codegen_flags: <defaults>
</compile_context>

<pallas_src>
import functools

import jax
import jax.numpy as jnp
import numpy as np
from jax.experimental import pallas as pl
from jax.experimental.pallas import tpu as pltpu


def _round_up(x, m):
    return ((x + m - 1) // m) * m


def _cdiv(a, b):
    return -(-a // b)


def _vmem_physical_bytes():
    """Physical VMEM of the local TPU generation (64 MiB conservative fallback: v7x per-TC)."""
    try:
        info = pltpu.get_tpu_info()
        cap = getattr(info, "vmem_capacity_bytes", None)
        if cap:
            return int(cap)
    except Exception:
        pass
    return 64 << 20


def _pick_tile_f(n_frames, n_fft, n_freq_pad, batch):
    """Frames per grid step: ~2 MiB of HBM traffic per step, multiple of 128."""
    bytes_per_frame = 2 * n_fft + 4 * n_freq_pad          # bf16 frame read + f32 power write
    t = (2 << 20) // bytes_per_frame
    t = max(256, min(t, 2048))
    t = (t // 128) * 128                                   # lane-dense transposed stores
    if t >= n_frames:
        # One tile per batch element covers the whole frame axis; 128 keeps the in-kernel
        # transpose and output stores on standard (128,128) tiles.
        return _round_up(max(n_frames, 128), 128)
    # v7x megacore: prefer an even total grid length when B is odd (both axes are 'parallel').
    if batch % 2 == 1:
        tiles = _cdiv(n_frames, t)
        if tiles % 2 == 1:
            for cand in range(t - 128, 255, -128):
                if _cdiv(n_frames, cand) % 2 == 0:
                    t = cand
                    break
    return t


def _vmem_limit_bytes(tile_f, n_fft, n_freq_pad):
    basis = n_fft * (2 * n_freq_pad) * 2                   # bf16 (x2 below: double-buffer fallback)
    frames = 2 * tile_f * n_fft * 2                        # bf16, double buffered
    out = 2 * n_freq_pad * tile_f * 4                      # f32, double buffered
    work = tile_f * (2 * n_freq_pad) * 4 + 2 * tile_f * n_freq_pad * 4   # y + power + transpose
    needed = 2 * basis + frames + out + work
    cap = _vmem_physical_bytes()
    limit = min(needed + (4 << 20), int(cap * 0.9))        # headroom for compiler scratch
    return int(max(limit, 16 << 20))


def _gaussian_window(lambd, n_fft, win_length, norm):
    """Gaussian window of width lambd, zero-padded (centered) to n_fft. Differentiable in lambd."""
    left = (n_fft - win_length) // 2
    n_idx = np.arange(n_fft)
    in_win = (n_idx >= left) & (n_idx < left + win_length)
    t = jnp.asarray(np.where(in_win, n_idx - left - (win_length - 1) / 2.0, 0.0), jnp.float32)
    mask = jnp.asarray(in_win, jnp.float32)
    w = jnp.exp(-0.5 * (t / lambd) ** 2) * mask
    if norm:
        w = w / jnp.sum(w)
    return w  # (n_fft,)


def _frame_signal(x, n_fft, hop, n_frames):
    """(B, T) -> (B, n_frames, n_fft) overlapping frames, frames[b,f] = x[b, f*hop : f*hop+n_fft].

    Called with the already bf16-quantized, reflect-padded waveform and with the *padded*
    frame count, so the framed array is emitted once, in bf16, at its final size.
    """
    B = x.shape[0]
    if n_fft % hop == 0:
        r = n_fft // hop
        n_chunks = n_frames - 1 + r
        needed = n_chunks * hop
        if x.shape[1] < needed:
            x = jnp.pad(x, ((0, 0), (0, needed - x.shape[1])))
        chunks = x[:, :needed].reshape(B, n_chunks, hop)
        # Pure slices + concat -> XLA fuses this; no gather.
        frames = jnp.concatenate([chunks[:, i:i + n_frames] for i in range(r)], axis=-1)
    else:
        last = (n_frames - 1) * hop + n_fft
        if x.shape[1] < last:
            x = jnp.pad(x, ((0, 0), (0, last - x.shape[1])))
        idx = jnp.arange(n_frames)[:, None] * hop + jnp.arange(n_fft)[None, :]
        frames = x[:, idx]
    return frames


def _dmel_kernel(frames_ref, basis_ref, out_ref, *, n_freq_pad):
    # frames: (tile_f, n_fft) bf16 ; basis: (n_fft, 2*Npad) bf16 (Gaussian window folded in)
    y = jnp.dot(frames_ref[...], basis_ref[...], preferred_element_type=jnp.float32)
    real = y[:, :n_freq_pad]              # lane-aligned static slices (Npad multiple of 128)
    imag = y[:, n_freq_pad:]
    power = real * real + imag * imag     # (tile_f, Npad) f32
    # XLU transpose (MXU/HBM-bound kernel -> the XLU slot is idle, this is ~free) so the
    # output is already in torch.stft's (freq, frame) layout — no wrapper transpose pass.
    out_ref[...] = power.T                # (Npad, tile_f)


def _pallas_power_spec(frames, wbasis, n_freq_pad, tile_f, vmem_limit, single_buffer_basis):
    B, f_pad, n_fft = frames.shape
    kernel = functools.partial(_dmel_kernel, n_freq_pad=n_freq_pad)
    if single_buffer_basis:
        # Constant index_map -> a second buffer is pure VMEM waste (matters at large n_fft on v7x).
        basis_spec = pl.BlockSpec((n_fft, 2 * n_freq_pad), lambda b, f: (0, 0),
                                  pipeline_mode=pl.Buffered(1))
    else:
        basis_spec = pl.BlockSpec((n_fft, 2 * n_freq_pad), lambda b, f: (0, 0))
    return pl.pallas_call(
        kernel,
        out_shape=jax.ShapeDtypeStruct((B, n_freq_pad, f_pad), jnp.float32),
        grid=(B, f_pad // tile_f),
        in_specs=[
            pl.BlockSpec((None, tile_f, n_fft), lambda b, f: (b, f, 0)),   # frames (bf16)
            basis_spec,                                                    # fused basis (resident)
        ],
        out_specs=pl.BlockSpec((None, n_freq_pad, tile_f), lambda b, f: (b, 0, f)),
        compiler_params=pltpu.CompilerParams(
            dimension_semantics=("parallel", "parallel"),
            vmem_limit_bytes=vmem_limit,
        ),
    )(frames, wbasis)


def _power_spec_impl(frames, wbasis, n_freq_pad, tile_f, vmem_limit):
    try:
        return _pallas_power_spec(frames, wbasis, n_freq_pad, tile_f, vmem_limit, True)
    except Exception:
        # Fallback if single-buffered operands (pl.Buffered(1)) are not supported.
        return _pallas_power_spec(frames, wbasis, n_freq_pad, tile_f, vmem_limit, False)


@functools.partial(jax.custom_vjp, nondiff_argnums=(2, 3, 4))
def _power_spec(frames, wbasis, n_freq_pad, tile_f, vmem_limit):
    """(B, Fpad, n_fft) bf16 frames, (n_fft, 2*Npad) bf16 fused basis -> (B, Npad, Fpad) f32."""
    return _power_spec_impl(frames, wbasis, n_freq_pad, tile_f, vmem_limit)


def _power_spec_fwd(frames, wbasis, n_freq_pad, tile_f, vmem_limit):
    out = _power_spec_impl(frames, wbasis, n_freq_pad, tile_f, vmem_limit)
    return out, (frames, wbasis)


def _power_spec_bwd(n_freq_pad, tile_f, vmem_limit, res, g):
    # Backward is two batched matmuls in plain JAX (pallas_call itself is not differentiated).
    frames, wbasis = res
    f = frames.astype(jnp.float32)                           # (B, Fpad, n_fft)
    w = wbasis.astype(jnp.float32)                           # (n_fft, 2*Npad)
    y = jnp.einsum("bfn,nk->bfk", f, w)                      # (B, Fpad, 2*Npad)
    gt = jnp.transpose(g, (0, 2, 1))                         # (B, Fpad, Npad)
    gy = jnp.concatenate([2.0 * y[..., :n_freq_pad] * gt,
                          2.0 * y[..., n_freq_pad:] * gt], axis=-1)
    d_frames = jnp.einsum("bfk,nk->bfn", gy, w).astype(frames.dtype)
    d_wbasis = jnp.einsum("bfn,bfk->nk", f, gy).astype(wbasis.dtype)
    return d_frames, d_wbasis


_power_spec.defvjp(_power_spec_fwd, _power_spec_bwd)


def dmel_forward(x, lambd, *, n_fft, win_length, hop_length, norm=False):
    B, T = x.shape
    n_freq = n_fft // 2 + 1
    n_freq_pad = _round_up(n_freq, 128)
    pad = n_fft // 2

    # ---- wrapper: demean (f32), reflect pad, single bf16 quantization BEFORE framing ----
    x = x.astype(jnp.float32)
    x = x - jnp.mean(x, axis=1, keepdims=True)
    x_pad = jnp.pad(x, ((0, 0), (pad, pad)), mode="reflect").astype(jnp.bfloat16)
    n_frames = 1 + (x_pad.shape[1] - n_fft) // hop_length

    tile_f = _pick_tile_f(n_frames, n_fft, n_freq_pad, B)
    n_frames_pad = _round_up(n_frames, tile_f)

    # Frame straight to the padded frame count (padding frames are all-zero, sliced away below).
    frames = _frame_signal(x_pad, n_fft, hop_length, n_frames_pad)    # (B, Fpad, n_fft) bf16

    # Fused, window-folded, lane-dense real-DFT basis: [ w*cos | 0 pad | w*sin | 0 pad ].
    w = _gaussian_window(lambd, n_fft, win_length, norm)              # differentiable in lambd
    ang = 2.0 * np.pi * np.arange(n_fft)[:, None] * np.arange(n_freq)[None, :] / n_fft
    basis_np = np.zeros((n_fft, 2 * n_freq_pad), np.float32)
    basis_np[:, :n_freq] = np.cos(ang)
    basis_np[:, n_freq_pad:n_freq_pad + n_freq] = np.sin(ang)
    wbasis = (w[:, None] * jnp.asarray(basis_np)).astype(jnp.bfloat16)   # (n_fft, 2*Npad)

    vmem_limit = _vmem_limit_bytes(tile_f, n_fft, n_freq_pad)

    out = _power_spec(frames, wbasis, n_freq_pad, tile_f, vmem_limit)    # (B, Npad, Fpad) f32

    # Output is already in (B, freq, frame) layout; only the padding slice remains.
    return out[:, :n_freq, :n_frames]


def dmel_reference(x, lambd, *, n_fft, win_length, hop_length, norm=False,
                   quantize_bf16=False):
    """Pure-JAX reference.

    quantize_bf16=True rounds the operands exactly as the kernel feeds the MXU
    (bf16 products are exact, accumulation in f32) for a tight structural check;
    False gives the full-f32 ground truth.
    """
    x = x.astype(jnp.float32)
    x = x - jnp.mean(x, axis=1, keepdims=True)
    pad = n_fft // 2
    n_freq = n_fft // 2 + 1
    x_pad = jnp.pad(x, ((0, 0), (pad, pad)), mode="reflect")
    n_frames = 1 + (x_pad.shape[1] - n_fft) // hop_length
    idx = jnp.arange(n_frames)[:, None] * hop_length + jnp.arange(n_fft)[None, :]
    frames = x_pad[:, idx]                                            # (B, n_frames, n_fft)

    w = _gaussian_window(lambd, n_fft, win_length, norm)
    ang = 2.0 * np.pi * np.arange(n_fft)[:, None] * np.arange(n_freq)[None, :] / n_fft
    wcos = w[:, None] * jnp.asarray(np.cos(ang), jnp.float32)
    wsin = w[:, None] * jnp.asarray(np.sin(ang), jnp.float32)
    if quantize_bf16:
        frames = frames.astype(jnp.bfloat16).astype(jnp.float32)
        wcos = wcos.astype(jnp.bfloat16).astype(jnp.float32)
        wsin = wsin.astype(jnp.bfloat16).astype(jnp.float32)

    real = jnp.einsum("bfn,nk->bfk", frames, wcos, precision=jax.lax.Precision.HIGHEST)
    imag = jnp.einsum("bfn,nk->bfk", frames, wsin, precision=jax.lax.Precision.HIGHEST)
    return jnp.transpose(real * real + imag * imag, (0, 2, 1))


if __name__ == "__main__":
    # Small, deterministic example consistent with the module's forward.
    B, T = 2, 512
    n_fft, win_length, hop_length = 128, 128, 64
    init_lambd = 8.0  # nn.Parameter(init_lambd)

    key = jax.random.PRNGKey(0)
    x = jax.random.normal(key, (B, T), dtype=jnp.float32)
    lambd = jnp.asarray(init_lambd, jnp.float32)

    out = dmel_forward(x, lambd, n_fft=n_fft, win_length=win_length,
                       hop_length=hop_length, norm=False)
    out = jax.block_until_ready(out)

    n_freq = n_fft // 2 + 1
    n_frames = 1 + T // hop_length
    assert out.shape == (B, n_freq, n_frames), out.shape
    assert out.dtype == jnp.float32

    # 1) Tight structural check: identical bf16-quantized operands, exact products,
    #    f32 accumulation -> isolates kernel / indexing / padding / transpose bugs
    #    from quantization (only the accumulation order differs).
    ref_q = dmel_reference(x, lambd, n_fft=n_fft, win_length=win_length,
                           hop_length=hop_length, norm=False, quantize_bf16=True)
    np.testing.assert_allclose(np.asarray(out), np.asarray(ref_q), rtol=2e-3, atol=2e-3)

    # 2) Ground-truth check vs full-f32 reference.  bf16 operand rounding (<=2^-9 per
    #    factor) bounds |d(real/imag)| ~ 0.05 for this config, so d|S|^2 ~ 2(|re|+|im|)*0.05:
    #    large bins are covered by rtol=3e-2, near-cancelled bins by atol=0.5
    #    (max |S|^2 here is O(100), so atol is ~0.3% of the dynamic range).
    ref = dmel_reference(x, lambd, n_fft=n_fft, win_length=win_length,
                         hop_length=hop_length, norm=False)
    np.testing.assert_allclose(np.asarray(out), np.asarray(ref), rtol=3e-2, atol=0.5)

    # 3) Gradient smoke test: lambd gradient flows through the custom_vjp and is finite.
    def _loss(l):
        return jnp.sum(dmel_forward(x, l, n_fft=n_fft, win_length=win_length,
                                    hop_length=hop_length, norm=False))
    g = jax.block_until_ready(jax.grad(_loss)(lambd))
    assert np.isfinite(np.asarray(g)), g

    print("KERNEL_OK")
</pallas_src>

<mosaic_0001>
module attributes {stable_mosaic.version = 11 : i64} {
  func.func @_dmel_kernel(%arg0: i32, %arg1: i32, %arg2: memref<1x128x128xbf16, #tpu.memory_space<vmem>>, %arg3: memref<128x256xbf16, #tpu.memory_space<vmem>>, %arg4: memref<1x128x128xf32, #tpu.memory_space<vmem>>) attributes {dimension_semantics = [#tpu.dimension_semantics<parallel>, #tpu.dimension_semantics<parallel>], iteration_bounds = array<i64: 2, 1>, scalar_prefetch = 0 : i64, scratch_operands = 0 : i64, tpu.core_type = #tpu.core_type<tc>, window_params = [{transform_indices = @transform_0, window_bounds = array<i64: 1, 128, 128>}, {pipeline_mode = #tpu.pipeline_mode<synchronous>, transform_indices = @transform_1, window_bounds = array<i64: 128, 256>}, {transform_indices = @transform_2, window_bounds = array<i64: 1, 128, 128>}]} {
    %c0 = arith.constant 0 : index
    %c0_0 = arith.constant 0 : index
    %c0_1 = arith.constant 0 : index
    %0 = vector.load %arg2[%c0, %c0_0, %c0_1] : memref<1x128x128xbf16, #tpu.memory_space<vmem>>, vector<1x128x128xbf16>
    %1 = vector.shape_cast %0 : vector<1x128x128xbf16> to vector<128x128xbf16>
    %c0_2 = arith.constant 0 : index
    %c0_3 = arith.constant 0 : index
    %2 = vector.load %arg3[%c0_2, %c0_3] : memref<128x256xbf16, #tpu.memory_space<vmem>>, vector<128x256xbf16>
    %cst = arith.constant dense<0.000000e+00> : vector<128x256xf32>
    %3 = tpu.matmul %1, %2, %cst {dimension_numbers = #tpu.dot_dimension_numbers<[1], [0], [0], [1], [0, 0, 1, 1], [], []>} : vector<128x128xbf16>, vector<128x256xbf16>, vector<128x256xf32> -> vector<128x256xf32>
    %4 = vector.extract_strided_slice %3 {offsets = [0, 0], sizes = [128, 128], strides = [1, 1]} : vector<128x256xf32> to vector<128x128xf32>
    %5 = vector.extract_strided_slice %3 {offsets = [0, 128], sizes = [128, 128], strides = [1, 1]} : vector<128x256xf32> to vector<128x128xf32>
    %6 = arith.mulf %4, %4 : vector<128x128xf32>
    %7 = arith.mulf %5, %5 : vector<128x128xf32>
    %8 = arith.addf %6, %7 : vector<128x128xf32>
    %9 = tpu.transpose %8, [1, 0] : vector<128x128xf32> -> vector<128x128xf32>
    %c0_4 = arith.constant 0 : index
    %c0_5 = arith.constant 0 : index
    %c0_6 = arith.constant 0 : index
    %10 = vector.load %arg4[%c0_4, %c0_5, %c0_6] : memref<1x128x128xf32, #tpu.memory_space<vmem>>, vector<1x128x128xf32>
    %11 = vector.shape_cast %10 : vector<1x128x128xf32> to vector<128x128xf32>
    %12 = vector.shape_cast %9 : vector<128x128xf32> to vector<1x128x128xf32>
    tpu.vector_store %arg4[%c0_4, %c0_5, %c0_6], %12 {strides = array<i32>} : memref<1x128x128xf32, #tpu.memory_space<vmem>>, vector<1x128x128xf32>,
    return
  }
  func.func @transform_0(%arg0: i32, %arg1: i32) -> (i32, i32, i32) {
    %c0_i32 = arith.constant 0 : i32
    %c0_i32_0 = arith.constant 0 : i32
    return %arg0, %arg1, %c0_i32 : i32, i32, i32
  }
  func.func @transform_1(%arg0: i32, %arg1: i32) -> (i32, i32) {
    %c0_i32 = arith.constant 0 : i32
    %c0_i32_0 = arith.constant 0 : i32
    %c0_i32_1 = arith.constant 0 : i32
    return %c0_i32, %c0_i32_0 : i32, i32
  }
  func.func @transform_2(%arg0: i32, %arg1: i32) -> (i32, i32, i32) {
    %c0_i32 = arith.constant 0 : i32
    %c0_i32_0 = arith.constant 0 : i32
    return %arg0, %c0_i32, %arg1 : i32, i32, i32
  }
}

module attributes {stable_mosaic.version = 11 : i64} {
  func.func @_dmel_kernel(%arg0: i32, %arg1: i32, %arg2: memref<1x128x128xbf16, #tpu.memory_space<vmem>>, %arg3: memref<128x256xbf16, #tpu.memory_space<vmem>>, %arg4: memref<1x128x128xf32, #tpu.memory_space<vmem>>) attributes {dimension_semantics = [#tpu.dimension_semantics<parallel>, #tpu.dimension_semantics<parallel>], iteration_bounds = array<i64: 2, 1>, scalar_prefetch = 0 : i64, scratch_operands = 0 : i64, tpu.core_type = #tpu.core_type<tc>, window_params = [{transform_indices = @transform_0, window_bounds = array<i64: 1, 128, 128>}, {pipeline_mode = #tpu.pipeline_mode<synchronous>, transform_indices = @transform_1, window_bounds = array<i64: 128, 256>}, {transform_indices = @transform_2, window_bounds = array<i64: 1, 128, 128>}]} {
    %c0 = arith.constant 0 : index
    %c0_0 = arith.constant 0 : index
    %c0_1 = arith.constant 0 : index
    %0 = vector.load %arg2[%c0, %c0_0, %c0_1] : memref<1x128x128xbf16, #tpu.memory_space<vmem>>, vector<1x128x128xbf16>
    %1 = vector.shape_cast %0 : vector<1x128x128xbf16> to vector<128x128xbf16>
    %c0_2 = arith.constant 0 : index
    %c0_3 = arith.constant 0 : index
    %2 = vector.load %arg3[%c0_2, %c0_3] : memref<128x256xbf16, #tpu.memory_space<vmem>>, vector<128x256xbf16>
    %cst = arith.constant dense<0.000000e+00> : vector<128x256xf32>
    %3 = tpu.matmul %1, %2, %cst {dimension_numbers = #tpu.dot_dimension_numbers<[1], [0], [0], [1], [0, 0, 1, 1], [], []>} : vector<128x128xbf16>, vector<128x256xbf16>, vector<128x256xf32> -> vector<128x256xf32>
    %4 = vector.extract_strided_slice %3 {offsets = [0, 0], sizes = [128, 128], strides = [1, 1]} : vector<128x256xf32> to vector<128x128xf32>
    %5 = vector.extract_strided_slice %3 {offsets = [0, 128], sizes = [128, 128], strides = [1, 1]} : vector<128x256xf32> to vector<128x128xf32>
    %6 = arith.mulf %4, %4 : vector<128x128xf32>
    %7 = arith.mulf %5, %5 : vector<128x128xf32>
    %8 = arith.addf %6, %7 : vector<128x128xf32>
    %9 = tpu.transpose %8, [1, 0] : vector<128x128xf32> -> vector<128x128xf32>
    %c0_4 = arith.constant 0 : index
    %c0_5 = arith.constant 0 : index
    %c0_6 = arith.constant 0 : index
    %10 = vector.load %arg4[%c0_4, %c0_5, %c0_6] : memref<1x128x128xf32, #tpu.memory_space<vmem>>, vector<1x128x128xf32>
    %11 = vector.shape_cast %10 : vector<1x128x128xf32> to vector<128x128xf32>
    %12 = vector.shape_cast %9 : vector<128x128xf32> to vector<1x128x128xf32>
    tpu.vector_store %arg4[%c0_4, %c0_5, %c0_6], %12 {strides = array<i32>} : memref<1x128x128xf32, #tpu.memory_space<vmem>>, vector<1x128x128xf32>,
    return
  }
  func.func @transform_0(%arg0: i32, %arg1: i32) -> (i32, i32, i32) {
    %c0_i32 = arith.constant 0 : i32
    %c0_i32_0 = arith.constant 0 : i32
    return %arg0, %arg1, %c0_i32 : i32, i32, i32
  }
  func.func @transform_1(%arg0: i32, %arg1: i32) -> (i32, i32) {
    %c0_i32 = arith.constant 0 : i32
    %c0_i32_0 = arith.constant 0 : i32
    %c0_i32_1 = arith.constant 0 : i32
    return %c0_i32, %c0_i32_0 : i32, i32
  }
  func.func @transform_2(%arg0: i32, %arg1: i32) -> (i32, i32, i32) {
    %c0_i32 = arith.constant 0 : i32
    %c0_i32_0 = arith.constant 0 : i32
    return %arg0, %c0_i32, %arg1 : i32, i32, i32
  }
}

</mosaic_0001>

<bundles_post_ra>
// kernel: tpu_custom_call.1
= control target key start
LH: loop header
LB: loop body
LE: loop exit
PB: predicated region body
PF: predicated region fallthrough
CT: control target
= control target key end

     0   :  { %7 = vsyncpa [#allocation3], 0  ;;  %s1250_s0 = inlined_call_operand.hbm [shape: bf16[2,128,128], index: 0, kind: input, shape index: {}]   ;;  %s1251_s1 = inlined_call_operand.hbm [shape: bf16[128,256], index: 1, kind: input, shape index: {}]   ;;  %s1252_s2 = inlined_call_operand.hbm [shape: f32[2,128,128], index: 2, kind: output, shape index: {}]  }
   0x1   :  { %9 = vsyncpa [#allocation3 + $0x1], 0 }
   0x2   :  { %10 = vsyncpa [#allocation6], 0 }
   0x3   :  { %11 = vsyncpa [#allocation4], 0 }
   0x4   :  { %13 = vsyncpa [#allocation4 + $0x1], 0  ;;  %s1071_s9 = smov 0   ;;  %s1073_s10 = smov 0  }
   0x5   :  { %s1075_s11 = smov 0   ;;  %s1077_s12 = smov 0  }
   0x6   :  { %s1079_s13 = smov 0   ;;  %s1081_s14 = smov 0  }
   0x7 LB: > { %s667_s15 = sadd.s32 4294967295, %s1047_s14   ;;  %s668_s16 = sadd.s32 4294967294, %s1047_s14   ;;  %s1047_s14 = sphi %s1081_s14, %s19_s14   ;;  %s1043_s13 = sphi %s1079_s13, %s1264_s13   ;;  %s1039_s12 = sphi %s1077_s12, %s1263_s12   ;;  %s1035_s11 = sphi %s1075_s11, %s1262_s11   ;;  %s1031_s10 = sphi %s1073_s10, %s1261_s10   ;;  %s1027_s9 = sphi %s1071_s9, %s1260_s9  }
   0x8   : > { %p53_p0 = scmp.ne.s32.totalorder %s1031_s10, %s1027_s9  ;;  %p1105_p1 = scmp.eq.s32.totalorder %s667_s15, 0 }
   0x9   : > { %p1109_p2 = scmp.eq.s32.totalorder %s667_s15, 1  ;;  %p106_p3 = scmp.eq.s32.totalorder %s668_s16, 1 }
   0xa   : > { %p1115_p4 = por %p1105_p1, %p53_p0  ;;  %p669_p5 = scmp.ge.s32.totalorder %s1047_s14, 1 }
   0xb   : > { %p1120_p6 = por %p106_p3, %p53_p0  ;;  %p113_p7 = scmp.lt.s32.totalorder %s1047_s14, 3 }
   0xc   : > { %s124_s23 = sshll.u32 %s1251_s1, 4  ;;  %s1049_s25 = smov [#allocation5]   ;;  %s125_s23 = int_to_ptr.hbm [resolvable:$true] %s124_s23 }
   0xd   : > { %p1128_p8 = pnand %p669_p5, %p113_p7  ;;  %s126_s26 = sshll.u32 %s1049_s25, 4  ;;  %s127_s26 = int_to_ptr.vmem [resolvable:$true] %s126_s26 }
   0xe   : > { %p671_p11 = scmp.ge.s32.totalorder %s1047_s14, 2  ;;  %s1050_s27 = smov 128  }
   0xf   : > { %p830_p9 = pneg %p1128_p8  ;;  %s1051_s28 = smov 8  }
  0x10   : > { %s31_s29 = sadd.s32 1, %s1043_s13  ;;  %s40_s30 = sadd.s32 1, %s1035_s11 }
  0x11   : > { %p831_p10 = pnand %p830_p9, %p1105_p1  ;;  %p33_p12 = scmp.ge.s32.totalorder %s31_s29, 2 }
  0x12   : > { %p47_p13 = scmp.ne.s32.totalorder %s1035_s11, %s1031_s10  ;;  %p48_p0 = scmp.eq.s32.totalorder %s1047_s14, 0 }
  0x13   : > { %833 = dma.hbm_to_vmem [thread:$0]  (!%p831_p10), %s125_s23, 2048, %s127_s26, [#allocation6], %s1050_s27, %s1050_s27, %s1051_s28  }
  0x14   : > { %s1266_s29 = smov (%p33_p12, %s31_s29), 0  ;;  %p1144_p3 = por %p48_p0, %p47_p13 }
  0x15   : > { %p1150_p5 = por %p1109_p2, %p47_p13  ;;  %s35_s5 = ssub.s32 %s1043_s13, %s1266_s29 }
  0x16   : > { %p843_p7 = scmp.lt.s32.totalorder %s1047_s14, 2  ;;  %p38_p9 = scmp.eq.s32.totalorder %s35_s5, 0 }
  0x17   : > { %s140_s6 = sand.u32 1, %s1035_s11   ;;  %s780_s15 = sshll.u32 %s1043_s13, 6 }
  0x18   : > { %s672_s7 = sshll.u32 %s140_s6, 6  ;;  %s151_s22 = scalar_lea.hbm %s1250_s0, %s780_s15 }
  0x19   : > { %s1159_s8 = scalar_select %p38_p9, %s1035_s11, %s40_s30  }
  0x1a   : > { %s144_s23 = scalar_lea.vmem [#allocation2], %s672_s7  ;;  %s152_s18 = sshll.u32 %s151_s22, 4  ;;  %s153_s18 = int_to_ptr.hbm [resolvable:$true] %s152_s18 }
  0x1b   : > { %s154_s25 = sshll.u32 %s144_s23, 4  ;;  %p835_p2 = pnand %p843_p7, %p1144_p3  ;;  %s155_s25 = int_to_ptr.vmem [resolvable:$true] %s154_s25 }
  0x1c   : > { %s141_s26 = scalar_lea.sflag [#allocation3], %s140_s6  ;;  %s1052_s27 = smov 64  }
  0x1d   : > { %s1053_s28 = smov 4   ;;  %166 = sbr.rel (%p1128_p8) target bundleno = 491 (0x1eb), region = 28 }
  0x1e   : > { %837 = dma.hbm_to_vmem [thread:$0]  (!%p835_p2), %s153_s18, 1024, %s155_s25, %s141_s26, %s1052_s27, %s1052_s27, %s1053_s28  }
  0x1f   : > { %s1170_s30 = sand.u32 (!%p1128_p8), 1, %s1031_s10  }
  0x20   : > { %s676_s5 = sshll.u32 (!%p1128_p8), %s1170_s30, 6  ;;  %s169_s7 = scalar_lea.sflag (!%p1128_p8), [#allocation3], %s1170_s30 }
  0x21   : > { %s1174_s15 = scalar_lea.vmem (!%p1128_p8), [#allocation2], %s676_s5 }
  0x22   : > { %1014 = dma.done.wait (%p1115_p4), %s169_s7, 1024  }
  0x23   : > { %1016 = vsyncadd (%p1115_p4), %s169_s7, 4294966272 }
  0x24   : > { %1018 = dma.done.wait (%p1105_p1), [#allocation6], 2048  }
  0x25   : > { %1020 = vsyncadd (%p1105_p1), [#allocation6], 4294965248  ;;  %v769_v0 = vld [vmem:[#allocation5 + $0x70] sm:$0xf]  ;;  %v804_v1 = vld [vmem:[#allocation5 + $0x74] sm:$0xf0] }
  0x26   : > { %v803_v2 = vld [vmem:[#allocation5 + $0x74] sm:$0xf]  ;;  %v770_v3 = vor.u32 %v804_v1, %v769_v0  ;;  %v771_v4 = vld [vmem:[#allocation5 + $0x78] sm:$0xf0]  ;;  %v761_v5 = vld [vmem:[#allocation5 + $0x60] sm:$0xf] }
  0x27   : > { %v802_v6 = vld [vmem:[#allocation5 + $0x64] sm:$0xf0]  ;;  %v774_v7 = vor.u32 %v803_v2, %v771_v4  ;;  %v801_v8 = vld [vmem:[#allocation5 + $0x64] sm:$0xf]  ;;  %v763_v9 = vld [vmem:[#allocation5 + $0x68] sm:$0xf0] }
  0x28   : > { %360 = vmatpush.bf16.msra.mxu0 %v770_v3  ;;  %v762_v10 = vor.u32 %v802_v6, %v761_v5  ;;  %806 = vmatpush.bf16.msra.mxu2 %v770_v3  ;;  %v766_v11 = vor.u32 %v801_v8, %v763_v9  ;;  %v753_v12 = vld [vmem:[#allocation5 + $0x50] sm:$0xf]  ;;  %v800_v13 = vld [vmem:[#allocation5 + $0x54] sm:$0xf0]  ;;  %v799_v14 = vld [vmem:[#allocation5 + $0x54] sm:$0xf] }
  0x29   : > { %409 = vmatpush.bf16.msra.mxu1 %v774_v7  ;;  %814 = vmatpush.bf16.msra.mxu3 %v774_v7  ;;  %v755_v15 = vld [vmem:[#allocation5 + $0x58] sm:$0xf0]  ;;  %v754_v16 = vor.u32 %v800_v13, %v753_v12  ;;  %v745_v18 = vld [vmem:[#allocation5 + $0x40] sm:$0xf]  ;;  %v798_v19 = vld [vmem:[#allocation5 + $0x44] sm:$0xf0] }
  0x2a   : > { %v758_v17 = vor.u32 %v799_v14, %v755_v15  ;;  %v797_v20 = vld [vmem:[#allocation5 + $0x44] sm:$0xf]  ;;  %v747_v21 = vld [vmem:[#allocation5 + $0x48] sm:$0xf0]  ;;  %v746_v22 = vor.u32 %v798_v19, %v745_v18  ;;  %v737_v24 = vld [vmem:[#allocation5 + $0x30] sm:$0xf] }
  0x2b   : > { %v750_v23 = vor.u32 %v797_v20, %v747_v21  ;;  %v796_v25 = vld [vmem:[#allocation5 + $0x34] sm:$0xf0]  ;;  %v795_v26 = vld [vmem:[#allocation5 + $0x34] sm:$0xf]  ;;  %v739_v27 = vld [vmem:[#allocation5 + $0x38] sm:$0xf0] }
  0x2c   : > { %361 = vmatpush.bf16.msra.mxu0 %v762_v10  ;;  %807 = vmatpush.bf16.msra.mxu2 %v762_v10  ;;  %v738_v28 = vor.u32 %v796_v25, %v737_v24  ;;  %v742_v29 = vor.u32 %v795_v26, %v739_v27  ;;  %v729_v30 = vld [vmem:[#allocation5 + $0x20] sm:$0xf]  ;;  %v794_v31 = vld [vmem:[#allocation5 + $0x24] sm:$0xf0]  ;;  %v793_v32 = vld [vmem:[#allocation5 + $0x24] sm:$0xf] }
  0x2d   : > { %410 = vmatpush.bf16.msra.mxu1 %v766_v11  ;;  %815 = vmatpush.bf16.msra.mxu3 %v766_v11  ;;  %v731_v33 = vld [vmem:[#allocation5 + $0x28] sm:$0xf0]  ;;  %v730_v34 = vor.u32 %v794_v31, %v729_v30  ;;  %v721_v36 = vld [vmem:[#allocation5 + $0x10] sm:$0xf]  ;;  %v792_v37 = vld [vmem:[#allocation5 + $0x14] sm:$0xf0] }
  0x2e   : > { %v734_v35 = vor.u32 %v793_v32, %v731_v33  ;;  %v791_v38 = vld [vmem:[#allocation5 + $0x14] sm:$0xf]  ;;  %v723_v39 = vld [vmem:[#allocation5 + $0x18] sm:$0xf0]  ;;  %v722_v40 = vor.u32 %v792_v37, %v721_v36  ;;  %v713_v42 = vld [vmem:[#allocation5] sm:$0xf] }
  0x2f   : > { %v726_v41 = vor.u32 %v791_v38, %v723_v39  ;;  %v790_v43 = vld [vmem:[#allocation5 + $0x4] sm:$0xf0]  ;;  %v789_v44 = vld [vmem:[#allocation5 + $0x4] sm:$0xf]  ;;  %v715_v45 = vld [vmem:[#allocation5 + $0x8] sm:$0xf0] }
  0x30   : > { %362 = vmatpush.bf16.msra.mxu0 %v754_v16  ;;  %808 = vmatpush.bf16.msra.mxu2 %v754_v16  ;;  %v714_v46 = vor.u32 %v790_v43, %v713_v42  ;;  %v718_v47 = vor.u32 %v789_v44, %v715_v45  ;;  %v781_v48 = vld [vmem:[%s1174_s15] sm:$0xff]  ;;  %v782_v49 = vld [vmem:[%s1174_s15 + $0x8] sm:$0xff]  ;;  %v783_v51 = vld [vmem:[%s1174_s15 + $0x10] sm:$0xff]  ;;  %s678_s17 = sshll.u32 %s1170_s30, 7  ;;  %s805_s24 = sshll.u32 %s1039_s12, 7 }
  0x31   : > { %411 = vmatpush.bf16.msra.mxu1 %v758_v17  ;;  %816 = vmatpush.bf16.msra.mxu3 %v758_v17  ;;  %v785_v50 = vld [vmem:[%s1174_s15 + $0x20] sm:$0xff]  ;;  %v786_v52 = vld [vmem:[%s1174_s15 + $0x28] sm:$0xff]  ;;  %v784_v53 = vld [vmem:[%s1174_s15 + $0x18] sm:$0xff]  ;;  %s1193_s19 = scalar_lea.vmem [#allocation7], %s678_s17  ;;  %s567_s16 = scalar_lea.hbm %s1252_s2, %s805_s24 }
  0x32   : > { %v787_v54 = vld [vmem:[%s1174_s15 + $0x30] sm:$0xff]  ;;  %v788_v55 = vld [vmem:[%s1174_s15 + $0x38] sm:$0xff]  ;;  %s568_s21 = sshll.u32 %s1193_s19, 4  ;;  %s570_s22 = sshll.u32 %s567_s16, 4  ;;  %s569_s21 = int_to_ptr.vmem [resolvable:$true] %s568_s21  ;;  %s571_s22 = int_to_ptr.hbm [resolvable:$true] %s570_s22 }
  0x33   : > { %s555_s23 = scalar_lea.sflag [#allocation4], %s1170_s30  ;;  %s975_s25 = sshra.s32 %s571_s22, 4  ;;  %s976_s25 = int_to_ptr.hbm [resolvable:$true] %s975_s25 }
  0x34   : > { %363 = vmatpush.bf16.msra.mxu0 %v746_v22  ;;  %809 = vmatpush.bf16.msra.mxu2 %v746_v22  ;;  %s977_s18 = scalar_lea.hbm %s976_s25, 128  ;;  %s981_s27 = scalar_lea.hbm %s1252_s2, 256 }
  0x35   : > { %412 = vmatpush.bf16.msra.mxu1 %v750_v23  ;;  %817 = vmatpush.bf16.msra.mxu3 %v750_v23  ;;  %p978_p1 = scmp.ne.s32.totalorder %s976_s25, %s977_s18  ;;  %p982_p10 = scmp.lt.s32.totalorder %s976_s25, %s1252_s2 }
  0x36   : > { %p983_p12 = scmp.lt.s32.totalorder %s981_s27, %s977_s18 }
  0x37   : > { %p979_p4 = pnand %p978_p1, %p1150_p5 }
  0x38   : > { %364 = vmatpush.bf16.msra.mxu0 %v738_v28  ;;  %810 = vmatpush.bf16.msra.mxu2 %v738_v28  ;;  %p984_p13 = por %p983_p12, %p982_p10 }
  0x39   : > { %413 = vmatpush.bf16.msra.mxu1 %v742_v29  ;;  %818 = vmatpush.bf16.msra.mxu3 %v742_v29  ;;  %p980_p8 = pneg %p979_p4 }
  0x3b   : > { %p985_p0 = pnand %p984_p13, %p980_p8 }
  0x3c   : > { %365 = vmatpush.bf16.msra.mxu0 %v730_v34  ;;  %811 = vmatpush.bf16.msra.mxu2 %v730_v34 }
  0x3d   : > { %414 = vmatpush.bf16.msra.mxu1 %v734_v35  ;;  %819 = vmatpush.bf16.msra.mxu3 %v734_v35 }
  0x40   : > { %366 = vmatpush.bf16.msra.mxu0 %v722_v40  ;;  %812 = vmatpush.bf16.msra.mxu2 %v722_v40 }
  0x41   : > { %415 = vmatpush.bf16.msra.mxu1 %v726_v41  ;;  %820 = vmatpush.bf16.msra.mxu3 %v726_v41 }
  0x44   : > { %367 = vmatpush.bf16.msra.mxu0 %v714_v46  ;;  %813 = vmatpush.bf16.msra.mxu2 %v714_v46 }
  0x45   : > { %416 = vmatpush.bf16.msra.mxu1 %v718_v47  ;;  %821 = vmatpush.bf16.msra.mxu3 %v718_v47 }
  0x47   : > { %368 = vmatmul.bf16.vlgmr.msra.gmra.mxu0 %v781_v48  ;;  %388 = vmatmul.bf16.vlgmr.msra.gmra.mxu2 %v785_v50 }
  0x48   : > { %417 = vmatmul.bf16.vlgmr.msra.gmra.mxu1 %v781_v48  ;;  %437 = vmatmul.bf16.vlgmr.msra.gmra.mxu3 %v785_v50 }
  0x57   : > { %373 = vmatmul.bf16.gmra.mxu0 %v782_v49  ;;  %393 = vmatmul.bf16.gmra.mxu2 %v786_v52 }
  0x58   : > { %422 = vmatmul.bf16.gmra.mxu1 %v782_v49  ;;  %442 = vmatmul.bf16.gmra.mxu3 %v786_v52 }
  0x67   : > { %378 = vmatmul.bf16.gmra.mxu0 %v783_v51  ;;  %398 = vmatmul.bf16.gmra.mxu2 %v787_v54 }
  0x68   : > { %427 = vmatmul.bf16.gmra.mxu1 %v783_v51  ;;  %447 = vmatmul.bf16.gmra.mxu3 %v787_v54 }
  0x77   : > { %383 = vmatmul.bf16.gmra.mxu0 %v784_v53  ;;  %403 = vmatmul.bf16.gmra.mxu2 %v788_v55 }
  0x78   : > { %432 = vmatmul.bf16.gmra.mxu1 %v784_v53  ;;  %452 = vmatmul.bf16.gmra.mxu3 %v788_v55 }
  0xc4   : > { %v369_v56 = vpop.f32.mrf.mxu0 }
  0xc5   : > { %v458_v57 = vmul.f32 %v369_v56, %v369_v56  ;;  %v418_v58 = vpop.f32.mrf.mxu1 }
  0xc6   : > { %v474_v59 = vmul.f32 %v418_v58, %v418_v58 }
  0xc8   : > { %v490_v60 = vadd.f32 %v474_v59, %v458_v57 }
  0xca   : > { %506 = vxpose.xlu0.b32.start [1/16] %v490_v60, 128  ;;  %v389_v22 = vpop.f32.mrf.mxu2 }
  0xcb   : > { %v438_v23 = vpop.f32.mrf.mxu3  ;;  %v466_v36 = vmul.f32 %v389_v22, %v389_v22 }
  0xcc   : > { %v371_v61 = vpop.f32.mrf.mxu0  ;;  %v482_v37 = vmul.f32 %v438_v23, %v438_v23 }
  0xcd   : > { %v459_v62 = vmul.f32 %v371_v61, %v371_v61  ;;  %v420_v63 = vpop.f32.mrf.mxu1 }
  0xce   : > { %v475_v0 = vmul.f32 %v420_v63, %v420_v63  ;;  %v498_v38 = vadd.f32 %v482_v37, %v466_v36 }
  0xd0   : > { %v491_v1 = vadd.f32 %v475_v0, %v459_v62 }
  0xd2   : > { %507 = vxpose.xlu0.b32.cont [2/16] %v491_v1, 128  ;;  %v391_v30 = vpop.f32.mrf.mxu2 }
  0xd3   : > { %v440_v33 = vpop.f32.mrf.mxu3  ;;  %v467_v41 = vmul.f32 %v391_v30, %v391_v30 }
  0xd4   : > { %v374_v2 = vpop.f32.mrf.mxu0  ;;  %v483_v42 = vmul.f32 %v440_v33, %v440_v33 }
  0xd5   : > { %v460_v3 = vmul.f32 %v374_v2, %v374_v2  ;;  %v423_v4 = vpop.f32.mrf.mxu1 }
  0xd6   : > { %v476_v5 = vmul.f32 %v423_v4, %v423_v4  ;;  %v499_v43 = vadd.f32 %v483_v42, %v467_v41 }
  0xd8   : > { %v492_v6 = vadd.f32 %v476_v5, %v460_v3 }
  0xda   : > { %508 = vxpose.xlu0.b32.cont [3/16] %v492_v6, 128  ;;  %v394_v39 = vpop.f32.mrf.mxu2 }
  0xdb   : > { %v443_v40 = vpop.f32.mrf.mxu3  ;;  %v468_v46 = vmul.f32 %v394_v39, %v394_v39 }
  0xdc   : > { %v376_v7 = vpop.f32.mrf.mxu0  ;;  %v484_v47 = vmul.f32 %v443_v40, %v443_v40 }
  0xdd   : > { %v461_v8 = vmul.f32 %v376_v7, %v376_v7  ;;  %v425_v9 = vpop.f32.mrf.mxu1 }
  0xde   : > { %v477_v10 = vmul.f32 %v425_v9, %v425_v9  ;;  %v500_v48 = vadd.f32 %v484_v47, %v468_v46 }
  0xe0   : > { %v493_v11 = vadd.f32 %v477_v10, %v461_v8 }
  0xe2   : > { %509 = vxpose.xlu0.b32.cont [4/16] %v493_v11, 128  ;;  %v396_v44 = vpop.f32.mrf.mxu2 }
  0xe3   : > { %v445_v45 = vpop.f32.mrf.mxu3  ;;  %v469_v51 = vmul.f32 %v396_v44, %v396_v44 }
  0xe4   : > { %v379_v12 = vpop.f32.mrf.mxu0  ;;  %v485_v52 = vmul.f32 %v445_v45, %v445_v45 }
  0xe5   : > { %v462_v13 = vmul.f32 %v379_v12, %v379_v12  ;;  %v428_v14 = vpop.f32.mrf.mxu1 }
  0xe6   : > { %v478_v15 = vmul.f32 %v428_v14, %v428_v14  ;;  %v501_v53 = vadd.f32 %v485_v52, %v469_v51 }
  0xe8   : > { %v494_v16 = vadd.f32 %v478_v15, %v462_v13 }
  0xea   : > { %510 = vxpose.xlu0.b32.cont [5/16] %v494_v16, 128  ;;  %v399_v49 = vpop.f32.mrf.mxu2 }
  0xeb   : > { %v448_v50 = vpop.f32.mrf.mxu3  ;;  %v470_v54 = vmul.f32 %v399_v49, %v399_v49 }
  0xec   : > { %v381_v17 = vpop.f32.mrf.mxu0  ;;  %v486_v55 = vmul.f32 %v448_v50, %v448_v50 }
  0xed   : > { %v463_v18 = vmul.f32 %v381_v17, %v381_v17  ;;  %v430_v19 = vpop.f32.mrf.mxu1 }
  0xee   : > { %v479_v20 = vmul.f32 %v430_v19, %v430_v19  ;;  %v502_v58 = vadd.f32 %v486_v55, %v470_v54 }
  0xf0   : > { %v495_v21 = vadd.f32 %v479_v20, %v463_v18 }
  0xf2   : > { %511 = vxpose.xlu0.b32.cont [6/16] %v495_v21, 128  ;;  %v401_v56 = vpop.f32.mrf.mxu2 }
  0xf3   : > { %v450_v57 = vpop.f32.mrf.mxu3  ;;  %v471_v59 = vmul.f32 %v401_v56, %v401_v56 }
  0xf4   : > { %v384_v24 = vpop.f32.mrf.mxu0  ;;  %v487_v60 = vmul.f32 %v450_v57, %v450_v57 }
  0xf5   : > { %v464_v25 = vmul.f32 %v384_v24, %v384_v24  ;;  %v433_v26 = vpop.f32.mrf.mxu1 }
  0xf6   : > { %v480_v27 = vmul.f32 %v433_v26, %v433_v26  ;;  %v503_v63 = vadd.f32 %v487_v60, %v471_v59 }
  0xf8   : > { %v496_v28 = vadd.f32 %v480_v27, %v464_v25 }
  0xfa   : > { %512 = vxpose.xlu0.b32.cont [7/16] %v496_v28, 128  ;;  %v404_v61 = vpop.f32.mrf.mxu2 }
  0xfb   : > { %v453_v62 = vpop.f32.mrf.mxu3  ;;  %v472_v0 = vmul.f32 %v404_v61, %v404_v61 }
  0xfc   : > { %v386_v29 = vpop.f32.mrf.mxu0  ;;  %v488_v1 = vmul.f32 %v453_v62, %v453_v62 }
  0xfd   : > { %v465_v31 = vmul.f32 %v386_v29, %v386_v29  ;;  %v435_v32 = vpop.f32.mrf.mxu1 }
  0xfe   : > { %v481_v34 = vmul.f32 %v435_v32, %v435_v32  ;;  %v504_v2 = vadd.f32 %v488_v1, %v472_v0 }
 0x100   : > { %v497_v35 = vadd.f32 %v481_v34, %v465_v31 }
 0x102   : > { %513 = vxpose.xlu0.b32.cont [8/16] %v497_v35, 128  ;;  %v406_v3 = vpop.f32.mrf.mxu2 }
 0x103   : > { %v455_v4 = vpop.f32.mrf.mxu3  ;;  %v473_v5 = vmul.f32 %v406_v3, %v406_v3 }
 0x104   : > { %v489_v6 = vmul.f32 %v455_v4, %v455_v4 }
 0x106   : > { %v505_v7 = vadd.f32 %v489_v6, %v473_v5 }
 0x10a   : > { %514 = vxpose.xlu0.b32.cont [9/16] %v498_v38, 128 }
 0x112   : > { %515 = vxpose.xlu0.b32.cont [10/16] %v499_v43, 128 }
 0x11a   : > { %516 = vxpose.xlu0.b32.cont [11/16] %v500_v48, 128 }
 0x122   : > { %517 = vxpose.xlu0.b32.cont [12/16] %v501_v53, 128 }
 0x12a   : > { %518 = vxpose.xlu0.b32.cont [13/16] %v502_v58, 128 }
 0x132   : > { %519 = vxpose.xlu0.b32.cont [14/16] %v503_v63, 128 }
 0x13a   : > { %520 = vxpose.xlu0.b32.cont [15/16] %v504_v2, 128 }
 0x142   : > { %521 = vxpose.xlu0.b32.end [16/16] %v505_v7, 128 }
 0x16e   : > { %v522_v8 = vpop.trf.xlu0 }
 0x16f   : > { %538 = vst [vmem:[%s1193_s19] sm:$0xff] %v522_v8 }
 0x176   : > { %v523_v9 = vpop.trf.xlu0 }
 0x177   : > { %539 = vst [vmem:[%s1193_s19 + $0x8] sm:$0xff] %v523_v9 }
 0x17e   : > { %v524_v10 = vpop.trf.xlu0 }
 0x17f   : > { %540 = vst [vmem:[%s1193_s19 + $0x10] sm:$0xff] %v524_v10 }
 0x186   : > { %v525_v11 = vpop.trf.xlu0 }
 0x187   : > { %541 = vst [vmem:[%s1193_s19 + $0x18] sm:$0xff] %v525_v11 }
 0x18e   : > { %v526_v12 = vpop.trf.xlu0 }
 0x18f   : > { %542 = vst [vmem:[%s1193_s19 + $0x20] sm:$0xff] %v526_v12 }
 0x196   : > { %v527_v13 = vpop.trf.xlu0 }
 0x197   : > { %543 = vst [vmem:[%s1193_s19 + $0x28] sm:$0xff] %v527_v13 }
 0x19e   : > { %v528_v14 = vpop.trf.xlu0 }
 0x19f   : > { %544 = vst [vmem:[%s1193_s19 + $0x30] sm:$0xff] %v528_v14 }
 0x1a6   : > { %v529_v15 = vpop.trf.xlu0 }
 0x1a7   : > { %545 = vst [vmem:[%s1193_s19 + $0x38] sm:$0xff] %v529_v15 }
 0x1ae   : > { %v530_v16 = vpop.trf.xlu0 }
 0x1af   : > { %546 = vst [vmem:[%s1193_s19 + $0x40] sm:$0xff] %v530_v16 }
 0x1b6   : > { %v531_v17 = vpop.trf.xlu0 }
 0x1b7   : > { %547 = vst [vmem:[%s1193_s19 + $0x48] sm:$0xff] %v531_v17 }
 0x1be   : > { %v532_v18 = vpop.trf.xlu0 }
 0x1bf   : > { %548 = vst [vmem:[%s1193_s19 + $0x50] sm:$0xff] %v532_v18 }
 0x1c6   : > { %v533_v19 = vpop.trf.xlu0 }
 0x1c7   : > { %549 = vst [vmem:[%s1193_s19 + $0x58] sm:$0xff] %v533_v19 }
 0x1ce   : > { %v534_v20 = vpop.trf.xlu0 }
 0x1cf   : > { %550 = vst [vmem:[%s1193_s19 + $0x60] sm:$0xff] %v534_v20 }
 0x1d6   : > { %v535_v21 = vpop.trf.xlu0 }
 0x1d7   : > { %551 = vst [vmem:[%s1193_s19 + $0x68] sm:$0xff] %v535_v21 }
 0x1de   : > { %v536_v22 = vpop.trf.xlu0 }
 0x1df   : > { %552 = vst [vmem:[%s1193_s19 + $0x70] sm:$0xff] %v536_v22 }
 0x1e6   : > { %v537_v23 = vpop.trf.xlu0 }
 0x1e7   : > { %553 = vst [vmem:[%s1193_s19 + $0x78] sm:$0xff] %v537_v23 }
 0x1e8   : > { %988 = shalt.err (!%p985_p0)
}
 0x1e9   : > { %s1054_s30 = smov 128   ;;  %s1055_s7 = smov 8  }
 0x1ea   : > { %828 = dma.vmem_to_hbm [thread:$0]  (%p1150_p5), %s569_s21, 2048, %s571_s22, %s555_s23, %s1054_s30, %s1054_s30, %s1055_s7  }
 0x1eb PF: > { %s585_s15 = sand.u32 1, %s1027_s9   ;;  %p839_p3 = pnand %p671_p11, %p1120_p6 }
 0x1ec   : > { %s586_s17 = scalar_lea.sflag [#allocation4], %s585_s15 }
 0x1ed   : > { %p840_p7 = pneg %p839_p3 }
 0x1ef   : > { %1022 = dma.done.wait (%p840_p7), %s586_s17, 2048  }
 0x1f0   : > { %1024 = vsyncadd (%p840_p7), %s586_s17, 4294965248  ;;  %s19_s14 = sadd.s32 1, %s1047_s14   ;;  %s1260_s9 = smov %s1031_s10 }
 0x1f1   : > { %p16_p9 = scmp.ge.s32.totalorder %s19_s14, 4   ;;  %s1261_s10 = smov %s1035_s11 }
 0x1f2   : > { %s1262_s11 = smov %s1159_s8  ;;  %s1263_s12 = smov %s1043_s13 }
 0x1f3   : > { %s1264_s13 = smov %s1266_s29  ;;  %18 = sbr.rel (!%p16_p9) target bundleno = 7 (0x7), region = 77 }
 0x1f8   :  { %592 = vsyncpa [#allocation3], 1 }
 0x1f9   :  { %594 = vsyncpa [#allocation3 + $0x1], 1 }
 0x1fa   :  { %595 = vsyncpa [#allocation6], 1 }
 0x1fb   :  { %596 = vsyncpa [#allocation4], 1 }
 0x1fc   :  { %598 = vsyncpa [#allocation4 + $0x1], 1 }

// kernel: tpu_custom_call.1
= control target key start
LH: loop header
LB: loop body
LE: loop exit
PB: predicated region body
PF: predicated region fallthrough
CT: control target
= control target key end

     0   :  { %7 = vsyncpa [#allocation3], 0  ;;  %s1250_s0 = inlined_call_operand.hbm [shape: bf16[2,128,128], index: 0, kind: input, shape index: {}]   ;;  %s1251_s1 = inlined_call_operand.hbm [shape: bf16[128,256], index: 1, kind: input, shape index: {}]   ;;  %s1252_s2 = inlined_call_operand.hbm [shape: f32[2,128,128], index: 2, kind: output, shape index: {}]  }
   0x1   :  { %9 = vsyncpa [#allocation3 + $0x1], 0 }
   0x2   :  { %10 = vsyncpa [#allocation6], 0 }
   0x3   :  { %11 = vsyncpa [#allocation4], 0 }
   0x4   :  { %13 = vsyncpa [#allocation4 + $0x1], 0  ;;  %s1071_s9 = smov 0   ;;  %s1073_s10 = smov 0  }
   0x5   :  { %s1075_s11 = smov 0   ;;  %s1077_s12 = smov 0  }
   0x6   :  { %s1079_s13 = smov 0   ;;  %s1081_s14 = smov 0  }
   0x7 LB: > { %s667_s15 = sadd.s32 4294967295, %s1047_s14   ;;  %s668_s16 = sadd.s32 4294967294, %s1047_s14   ;;  %s1047_s14 = sphi %s1081_s14, %s19_s14   ;;  %s1043_s13 = sphi %s1079_s13, %s1264_s13   ;;  %s1039_s12 = sphi %s1077_s12, %s1263_s12   ;;  %s1035_s11 = sphi %s1075_s11, %s1262_s11   ;;  %s1031_s10 = sphi %s1073_s10, %s1261_s10   ;;  %s1027_s9 = sphi %s1071_s9, %s1260_s9  }
   0x8   : > { %p53_p0 = scmp.ne.s32.totalorder %s1031_s10, %s1027_s9  ;;  %p1105_p1 = scmp.eq.s32.totalorder %s667_s15, 0 }
   0x9   : > { %p1109_p2 = scmp.eq.s32.totalorder %s667_s15, 1  ;;  %p106_p3 = scmp.eq.s32.totalorder %s668_s16, 1 }
   0xa   : > { %p1115_p4 = por %p1105_p1, %p53_p0  ;;  %p669_p5 = scmp.ge.s32.totalorder %s1047_s14, 1 }
   0xb   : > { %p1120_p6 = por %p106_p3, %p53_p0  ;;  %p113_p7 = scmp.lt.s32.totalorder %s1047_s14, 3 }
   0xc   : > { %s124_s23 = sshll.u32 %s1251_s1, 4  ;;  %s1049_s25 = smov [#allocation5]   ;;  %s125_s23 = int_to_ptr.hbm [resolvable:$true] %s124_s23 }
   0xd   : > { %p1128_p8 = pnand %p669_p5, %p113_p7  ;;  %s126_s26 = sshll.u32 %s1049_s25, 4  ;;  %s127_s26 = int_to_ptr.vmem [resolvable:$true] %s126_s26 }
   0xe   : > { %p671_p11 = scmp.ge.s32.totalorder %s1047_s14, 2  ;;  %s1050_s27 = smov 128  }
   0xf   : > { %p830_p9 = pneg %p1128_p8  ;;  %s1051_s28 = smov 8  }
  0x10   : > { %s31_s29 = sadd.s32 1, %s1043_s13  ;;  %s40_s30 = sadd.s32 1, %s1035_s11 }
  0x11   : > { %p831_p10 = pnand %p830_p9, %p1105_p1  ;;  %p33_p12 = scmp.ge.s32.totalorder %s31_s29, 2 }
  0x12   : > { %p47_p13 = scmp.ne.s32.totalorder %s1035_s11, %s1031_s10  ;;  %p48_p0 = scmp.eq.s32.totalorder %s1047_s14, 0 }
  0x13   : > { %833 = dma.hbm_to_vmem [thread:$0]  (!%p831_p10), %s125_s23, 2048, %s127_s26, [#allocation6], %s1050_s27, %s1050_s27, %s1051_s28  }
  0x14   : > { %s1266_s29 = smov (%p33_p12, %s31_s29), 0  ;;  %p1144_p3 = por %p48_p0, %p47_p13 }
  0x15   : > { %p1150_p5 = por %p1109_p2, %p47_p13  ;;  %s35_s5 = ssub.s32 %s1043_s13, %s1266_s29 }
  0x16   : > { %p843_p7 = scmp.lt.s32.totalorder %s1047_s14, 2  ;;  %p38_p9 = scmp.eq.s32.totalorder %s35_s5, 0 }
  0x17   : > { %s140_s6 = sand.u32 1, %s1035_s11   ;;  %s780_s15 = sshll.u32 %s1043_s13, 6 }
  0x18   : > { %s672_s7 = sshll.u32 %s140_s6, 6  ;;  %s151_s22 = scalar_lea.hbm %s1250_s0, %s780_s15 }
  0x19   : > { %s1159_s8 = scalar_select %p38_p9, %s1035_s11, %s40_s30  }
  0x1a   : > { %s144_s23 = scalar_lea.vmem [#allocation2], %s672_s7  ;;  %s152_s18 = sshll.u32 %s151_s22, 4  ;;  %s153_s18 = int_to_ptr.hbm [resolvable:$true] %s152_s18 }
  0x1b   : > { %s154_s25 = sshll.u32 %s144_s23, 4  ;;  %p835_p2 = pnand %p843_p7, %p1144_p3  ;;  %s155_s25 = int_to_ptr.vmem [resolvable:$true] %s154_s25 }
  0x1c   : > { %s141_s26 = scalar_lea.sflag [#allocation3], %s140_s6  ;;  %s1052_s27 = smov 64  }
  0x1d   : > { %s1053_s28 = smov 4   ;;  %166 = sbr.rel (%p1128_p8) target bundleno = 491 (0x1eb), region = 28 }
  0x1e   : > { %837 = dma.hbm_to_vmem [thread:$0]  (!%p835_p2), %s153_s18, 1024, %s155_s25, %s141_s26, %s1052_s27, %s1052_s27, %s1053_s28  }
  0x1f   : > { %s1170_s30 = sand.u32 (!%p1128_p8), 1, %s1031_s10  }
  0x20   : > { %s676_s5 = sshll.u32 (!%p1128_p8), %s1170_s30, 6  ;;  %s169_s7 = scalar_lea.sflag (!%p1128_p8), [#allocation3], %s1170_s30 }
  0x21   : > { %s1174_s15 = scalar_lea.vmem (!%p1128_p8), [#allocation2], %s676_s5 }
  0x22   : > { %1014 = dma.done.wait (%p1115_p4), %s169_s7, 1024  }
  0x23   : > { %1016 = vsyncadd (%p1115_p4), %s169_s7, 4294966272 }
  0x24   : > { %1018 = dma.done.wait (%p1105_p1), [#allocation6], 2048  }
  0x25   : > { %1020 = vsyncadd (%p1105_p1), [#allocation6], 4294965248  ;;  %v769_v0 = vld [vmem:[#allocation5 + $0x70] sm:$0xf]  ;;  %v804_v1 = vld [vmem:[#allocation5 + $0x74] sm:$0xf0] }
  0x26   : > { %v803_v2 = vld [vmem:[#allocation5 + $0x74] sm:$0xf]  ;;  %v770_v3 = vor.u32 %v804_v1, %v769_v0  ;;  %v771_v4 = vld [vmem:[#allocation5 + $0x78] sm:$0xf0]  ;;  %v761_v5 = vld [vmem:[#allocation5 + $0x60] sm:$0xf] }
  0x27   : > { %v802_v6 = vld [vmem:[#allocation5 + $0x64] sm:$0xf0]  ;;  %v774_v7 = vor.u32 %v803_v2, %v771_v4  ;;  %v801_v8 = vld [vmem:[#allocation5 + $0x64] sm:$0xf]  ;;  %v763_v9 = vld [vmem:[#allocation5 + $0x68] sm:$0xf0] }
  0x28   : > { %360 = vmatpush.bf16.msra.mxu0 %v770_v3  ;;  %v762_v10 = vor.u32 %v802_v6, %v761_v5  ;;  %806 = vmatpush.bf16.msra.mxu2 %v770_v3  ;;  %v766_v11 = vor.u32 %v801_v8, %v763_v9  ;;  %v753_v12 = vld [vmem:[#allocation5 + $0x50] sm:$0xf]  ;;  %v800_v13 = vld [vmem:[#allocation5 + $0x54] sm:$0xf0]  ;;  %v799_v14 = vld [vmem:[#allocation5 + $0x54] sm:$0xf] }
  0x29   : > { %409 = vmatpush.bf16.msra.mxu1 %v774_v7  ;;  %814 = vmatpush.bf16.msra.mxu3 %v774_v7  ;;  %v755_v15 = vld [vmem:[#allocation5 + $0x58] sm:$0xf0]  ;;  %v754_v16 = vor.u32 %v800_v13, %v753_v12  ;;  %v745_v18 = vld [vmem:[#allocation5 + $0x40] sm:$0xf]  ;;  %v798_v19 = vld [vmem:[#allocation5 + $0x44] sm:$0xf0] }
  0x2a   : > { %v758_v17 = vor.u32 %v799_v14, %v755_v15  ;;  %v797_v20 = vld [vmem:[#allocation5 + $0x44] sm:$0xf]  ;;  %v747_v21 = vld [vmem:[#allocation5 + $0x48] sm:$0xf0]  ;;  %v746_v22 = vor.u32 %v798_v19, %v745_v18  ;;  %v737_v24 = vld [vmem:[#allocation5 + $0x30] sm:$0xf] }
  0x2b   : > { %v750_v23 = vor.u32 %v797_v20, %v747_v21  ;;  %v796_v25 = vld [vmem:[#allocation5 + $0x34] sm:$0xf0]  ;;  %v795_v26 = vld [vmem:[#allocation5 + $0x34] sm:$0xf]  ;;  %v739_v27 = vld [vmem:[#allocation5 + $0x38] sm:$0xf0] }
  0x2c   : > { %361 = vmatpush.bf16.msra.mxu0 %v762_v10  ;;  %807 = vmatpush.bf16.msra.mxu2 %v762_v10  ;;  %v738_v28 = vor.u32 %v796_v25, %v737_v24  ;;  %v742_v29 = vor.u32 %v795_v26, %v739_v27  ;;  %v729_v30 = vld [vmem:[#allocation5 + $0x20] sm:$0xf]  ;;  %v794_v31 = vld [vmem:[#allocation5 + $0x24] sm:$0xf0]  ;;  %v793_v32 = vld [vmem:[#allocation5 + $0x24] sm:$0xf] }
  0x2d   : > { %410 = vmatpush.bf16.msra.mxu1 %v766_v11  ;;  %815 = vmatpush.bf16.msra.mxu3 %v766_v11  ;;  %v731_v33 = vld [vmem:[#allocation5 + $0x28] sm:$0xf0]  ;;  %v730_v34 = vor.u32 %v794_v31, %v729_v30  ;;  %v721_v36 = vld [vmem:[#allocation5 + $0x10] sm:$0xf]  ;;  %v792_v37 = vld [vmem:[#allocation5 + $0x14] sm:$0xf0] }
  0x2e   : > { %v734_v35 = vor.u32 %v793_v32, %v731_v33  ;;  %v791_v38 = vld [vmem:[#allocation5 + $0x14] sm:$0xf]  ;;  %v723_v39 = vld [vmem:[#allocation5 + $0x18] sm:$0xf0]  ;;  %v722_v40 = vor.u32 %v792_v37, %v721_v36  ;;  %v713_v42 = vld [vmem:[#allocation5] sm:$0xf] }
  0x2f   : > { %v726_v41 = vor.u32 %v791_v38, %v723_v39  ;;  %v790_v43 = vld [vmem:[#allocation5 + $0x4] sm:$0xf0]  ;;  %v789_v44 = vld [vmem:[#allocation5 + $0x4] sm:$0xf]  ;;  %v715_v45 = vld [vmem:[#allocation5 + $0x8] sm:$0xf0] }
  0x30   : > { %362 = vmatpush.bf16.msra.mxu0 %v754_v16  ;;  %808 = vmatpush.bf16.msra.mxu2 %v754_v16  ;;  %v714_v46 = vor.u32 %v790_v43, %v713_v42  ;;  %v718_v47 = vor.u32 %v789_v44, %v715_v45  ;;  %v781_v48 = vld [vmem:[%s1174_s15] sm:$0xff]  ;;  %v782_v49 = vld [vmem:[%s1174_s15 + $0x8] sm:$0xff]  ;;  %v783_v51 = vld [vmem:[%s1174_s15 + $0x10] sm:$0xff]  ;;  %s678_s17 = sshll.u32 %s1170_s30, 7  ;;  %s805_s24 = sshll.u32 %s1039_s12, 7 }
  0x31   : > { %411 = vmatpush.bf16.msra.mxu1 %v758_v17  ;;  %816 = vmatpush.bf16.msra.mxu3 %v758_v17  ;;  %v785_v50 = vld [vmem:[%s1174_s15 + $0x20] sm:$0xff]  ;;  %v786_v52 = vld [vmem:[%s1174_s15 + $0x28] sm:$0xff]  ;;  %v784_v53 = vld [vmem:[%s1174_s15 + $0x18] sm:$0xff]  ;;  %s1193_s19 = scalar_lea.vmem [#allocation7], %s678_s17  ;;  %s567_s16 = scalar_lea.hbm %s1252_s2, %s805_s24 }
  0x32   : > { %v787_v54 = vld [vmem:[%s1174_s15 + $0x30] sm:$0xff]  ;;  %v788_v55 = vld [vmem:[%s1174_s15 + $0x38] sm:$0xff]  ;;  %s568_s21 = sshll.u32 %s1193_s19, 4  ;;  %s570_s22 = sshll.u32 %s567_s16, 4  ;;  %s569_s21 = int_to_ptr.vmem [resolvable:$true] %s568_s21  ;;  %s571_s22 = int_to_ptr.hbm [resolvable:$true] %s570_s22 }
  0x33   : > { %s555_s23 = scalar_lea.sflag [#allocation4], %s1170_s30  ;;  %s975_s25 = sshra.s32 %s571_s22, 4  ;;  %s976_s25 = int_to_ptr.hbm [resolvable:$true] %s975_s25 }
  0x34   : > { %363 = vmatpush.bf16.msra.mxu0 %v746_v22  ;;  %809 = vmatpush.bf16.msra.mxu2 %v746_v22  ;;  %s977_s18 = scalar_lea.hbm %s976_s25, 128  ;;  %s981_s27 = scalar_lea.hbm %s1252_s2, 256 }
  0x35   : > { %412 = vmatpush.bf16.msra.mxu1 %v750_v23  ;;  %817 = vmatpush.bf16.msra.mxu3 %v750_v23  ;;  %p978_p1 = scmp.ne.s32.totalorder %s976_s25, %s977_s18  ;;  %p982_p10 = scmp.lt.s32.totalorder %s976_s25, %s1252_s2 }
  0x36   : > { %p983_p12 = scmp.lt.s32.totalorder %s981_s27, %s977_s18 }
  0x37   : > { %p979_p4 = pnand %p978_p1, %p1150_p5 }
  0x38   : > { %364 = vmatpush.bf16.msra.mxu0 %v738_v28  ;;  %810 = vmatpush.bf16.msra.mxu2 %v738_v28  ;;  %p984_p13 = por %p983_p12, %p982_p10 }
  0x39   : > { %413 = vmatpush.bf16.msra.mxu1 %v742_v29  ;;  %818 = vmatpush.bf16.msra.mxu3 %v742_v29  ;;  %p980_p8 = pneg %p979_p4 }
  0x3b   : > { %p985_p0 = pnand %p984_p13, %p980_p8 }
  0x3c   : > { %365 = vmatpush.bf16.msra.mxu0 %v730_v34  ;;  %811 = vmatpush.bf16.msra.mxu2 %v730_v34 }
  0x3d   : > { %414 = vmatpush.bf16.msra.mxu1 %v734_v35  ;;  %819 = vmatpush.bf16.msra.mxu3 %v734_v35 }
  0x40   : > { %366 = vmatpush.bf16.msra.mxu0 %v722_v40  ;;  %812 = vmatpush.bf16.msra.mxu2 %v722_v40 }
  0x41   : > { %415 = vmatpush.bf16.msra.mxu1 %v726_v41  ;;  %820 = vmatpush.bf16.msra.mxu3 %v726_v41 }
  0x44   : > { %367 = vmatpush.bf16.msra.mxu0 %v714_v46  ;;  %813 = vmatpush.bf16.msra.mxu2 %v714_v46 }
  0x45   : > { %416 = vmatpush.bf16.msra.mxu1 %v718_v47  ;;  %821 = vmatpush.bf16.msra.mxu3 %v718_v47 }
  0x47   : > { %368 = vmatmul.bf16.vlgmr.msra.gmra.mxu0 %v781_v48  ;;  %388 = vmatmul.bf16.vlgmr.msra.gmra.mxu2 %v785_v50 }
  0x48   : > { %417 = vmatmul.bf16.vlgmr.msra.gmra.mxu1 %v781_v48  ;;  %437 = vmatmul.bf16.vlgmr.msra.gmra.mxu3 %v785_v50 }
  0x57   : > { %373 = vmatmul.bf16.gmra.mxu0 %v782_v49  ;;  %393 = vmatmul.bf16.gmra.mxu2 %v786_v52 }
  0x58   : > { %422 = vmatmul.bf16.gmra.mxu1 %v782_v49  ;;  %442 = vmatmul.bf16.gmra.mxu3 %v786_v52 }
  0x67   : > { %378 = vmatmul.bf16.gmra.mxu0 %v783_v51  ;;  %398 = vmatmul.bf16.gmra.mxu2 %v787_v54 }
  0x68   : > { %427 = vmatmul.bf16.gmra.mxu1 %v783_v51  ;;  %447 = vmatmul.bf16.gmra.mxu3 %v787_v54 }
  0x77   : > { %383 = vmatmul.bf16.gmra.mxu0 %v784_v53  ;;  %403 = vmatmul.bf16.gmra.mxu2 %v788_v55 }
  0x78   : > { %432 = vmatmul.bf16.gmra.mxu1 %v784_v53  ;;  %452 = vmatmul.bf16.gmra.mxu3 %v788_v55 }
  0xc4   : > { %v369_v56 = vpop.f32.mrf.mxu0 }
  0xc5   : > { %v458_v57 = vmul.f32 %v369_v56, %v369_v56  ;;  %v418_v58 = vpop.f32.mrf.mxu1 }
  0xc6   : > { %v474_v59 = vmul.f32 %v418_v58, %v418_v58 }
  0xc8   : > { %v490_v60 = vadd.f32 %v474_v59, %v458_v57 }
  0xca   : > { %506 = vxpose.xlu0.b32.start [1/16] %v490_v60, 128  ;;  %v389_v22 = vpop.f32.mrf.mxu2 }
  0xcb   : > { %v438_v23 = vpop.f32.mrf.mxu3  ;;  %v466_v36 = vmul.f32 %v389_v22, %v389_v22 }
  0xcc   : > { %v371_v61 = vpop.f32.mrf.mxu0  ;;  %v482_v37 = vmul.f32 %v438_v23, %v438_v23 }
  0xcd   : > { %v459_v62 = vmul.f32 %v371_v61, %v371_v61  ;;  %v420_v63 = vpop.f32.mrf.mxu1 }
  0xce   : > { %v475_v0 = vmul.f32 %v420_v63, %v420_v63  ;;  %v498_v38 = vadd.f32 %v482_v37, %v466_v36 }
  0xd0   : > { %v491_v1 = vadd.f32 %v475_v0, %v459_v62 }
  0xd2   : > { %507 = vxpose.xlu0.b32.cont [2/16] %v491_v1, 128  ;;  %v391_v30 = vpop.f32.mrf.mxu2 }
  0xd3   : > { %v440_v33 = vpop.f32.mrf.mxu3  ;;  %v467_v41 = vmul.f32 %v391_v30, %v391_v30 }
  0xd4   : > { %v374_v2 = vpop.f32.mrf.mxu0  ;;  %v483_v42 = vmul.f32 %v440_v33, %v440_v33 }
  0xd5   : > { %v460_v3 = vmul.f32 %v374_v2, %v374_v2  ;;  %v423_v4 = vpop.f32.mrf.mxu1 }
  0xd6   : > { %v476_v5 = vmul.f32 %v423_v4, %v423_v4  ;;  %v499_v43 = vadd.f32 %v483_v42, %v467_v41 }
  0xd8   : > { %v492_v6 = vadd.f32 %v476_v5, %v460_v3 }
  0xda   : > { %508 = vxpose.xlu0.b32.cont [3/16] %v492_v6, 128  ;;  %v394_v39 = vpop.f32.mrf.mxu2 }
  0xdb   : > { %v443_v40 = vpop.f32.mrf.mxu3  ;;  %v468_v46 = vmul.f32 %v394_v39, %v394_v39 }
  0xdc   : > { %v376_v7 = vpop.f32.mrf.mxu0  ;;  %v484_v47 = vmul.f32 %v443_v40, %v443_v40 }
  0xdd   : > { %v461_v8 = vmul.f32 %v376_v7, %v376_v7  ;;  %v425_v9 = vpop.f32.mrf.mxu1 }
  0xde   : > { %v477_v10 = vmul.f32 %v425_v9, %v425_v9  ;;  %v500_v48 = vadd.f32 %v484_v47, %v468_v46 }
  0xe0   : > { %v493_v11 = vadd.f32 %v477_v10, %v461_v8 }
  0xe2   : > { %509 = vxpose.xlu0.b32.cont [4/16] %v493_v11, 128  ;;  %v396_v44 = vpop.f32.mrf.mxu2 }
  0xe3   : > { %v445_v45 = vpop.f32.mrf.mxu3  ;;  %v469_v51 = vmul.f32 %v396_v44, %v396_v44 }
  0xe4   : > { %v379_v12 = vpop.f32.mrf.mxu0  ;;  %v485_v52 = vmul.f32 %v445_v45, %v445_v45 }
  0xe5   : > { %v462_v13 = vmul.f32 %v379_v12, %v379_v12  ;;  %v428_v14 = vpop.f32.mrf.mxu1 }
  0xe6   : > { %v478_v15 = vmul.f32 %v428_v14, %v428_v14  ;;  %v501_v53 = vadd.f32 %v485_v52, %v469_v51 }
  0xe8   : > { %v494_v16 = vadd.f32 %v478_v15, %v462_v13 }
  0xea   : > { %510 = vxpose.xlu0.b32.cont [5/16] %v494_v16, 128  ;;  %v399_v49 = vpop.f32.mrf.mxu2 }
  0xeb   : > { %v448_v50 = vpop.f32.mrf.mxu3  ;;  %v470_v54 = vmul.f32 %v399_v49, %v399_v49 }
  0xec   : > { %v381_v17 = vpop.f32.mrf.mxu0  ;;  %v486_v55 = vmul.f32 %v448_v50, %v448_v50 }
  0xed   : > { %v463_v18 = vmul.f32 %v381_v17, %v381_v17  ;;  %v430_v19 = vpop.f32.mrf.mxu1 }
  0xee   : > { %v479_v20 = vmul.f32 %v430_v19, %v430_v19  ;;  %v502_v58 = vadd.f32 %v486_v55, %v470_v54 }
  0xf0   : > { %v495_v21 = vadd.f32 %v479_v20, %v463_v18 }
  0xf2   : > { %511 = vxpose.xlu0.b32.cont [6/16] %v495_v21, 128  ;;  %v401_v56 = vpop.f32.mrf.mxu2 }
  0xf3   : > { %v450_v57 = vpop.f32.mrf.mxu3  ;;  %v471_v59 = vmul.f32 %v401_v56, %v401_v56 }
  0xf4   : > { %v384_v24 = vpop.f32.mrf.mxu0  ;;  %v487_v60 = vmul.f32 %v450_v57, %v450_v57 }
  0xf5   : > { %v464_v25 = vmul.f32 %v384_v24, %v384_v24  ;;  %v433_v26 = vpop.f32.mrf.mxu1 }
  0xf6   : > { %v480_v27 = vmul.f32 %v433_v26, %v433_v26  ;;  %v503_v63 = vadd.f32 %v487_v60, %v471_v59 }
  0xf8   : > { %v496_v28 = vadd.f32 %v480_v27, %v464_v25 }
  0xfa   : > { %512 = vxpose.xlu0.b32.cont [7/16] %v496_v28, 128  ;;  %v404_v61 = vpop.f32.mrf.mxu2 }
  0xfb   : > { %v453_v62 = vpop.f32.mrf.mxu3  ;;  %v472_v0 = vmul.f32 %v404_v61, %v404_v61 }
  0xfc   : > { %v386_v29 = vpop.f32.mrf.mxu0  ;;  %v488_v1 = vmul.f32 %v453_v62, %v453_v62 }
  0xfd   : > { %v465_v31 = vmul.f32 %v386_v29, %v386_v29  ;;  %v435_v32 = vpop.f32.mrf.mxu1 }
  0xfe   : > { %v481_v34 = vmul.f32 %v435_v32, %v435_v32  ;;  %v504_v2 = vadd.f32 %v488_v1, %v472_v0 }
 0x100   : > { %v497_v35 = vadd.f32 %v481_v34, %v465_v31 }
 0x102   : > { %513 = vxpose.xlu0.b32.cont [8/16] %v497_v35, 128  ;;  %v406_v3 = vpop.f32.mrf.mxu2 }
 0x103   : > { %v455_v4 = vpop.f32.mrf.mxu3  ;;  %v473_v5 = vmul.f32 %v406_v3, %v406_v3 }
 0x104   : > { %v489_v6 = vmul.f32 %v455_v4, %v455_v4 }
 0x106   : > { %v505_v7 = vadd.f32 %v489_v6, %v473_v5 }
 0x10a   : > { %514 = vxpose.xlu0.b32.cont [9/16] %v498_v38, 128 }
 0x112   : > { %515 = vxpose.xlu0.b32.cont [10/16] %v499_v43, 128 }
 0x11a   : > { %516 = vxpose.xlu0.b32.cont [11/16] %v500_v48, 128 }
 0x122   : > { %517 = vxpose.xlu0.b32.cont [12/16] %v501_v53, 128 }
 0x12a   : > { %518 = vxpose.xlu0.b32.cont [13/16] %v502_v58, 128 }
 0x132   : > { %519 = vxpose.xlu0.b32.cont [14/16] %v503_v63, 128 }
 0x13a   : > { %520 = vxpose.xlu0.b32.cont [15/16] %v504_v2, 128 }
 0x142   : > { %521 = vxpose.xlu0.b32.end [16/16] %v505_v7, 128 }
 0x16e   : > { %v522_v8 = vpop.trf.xlu0 }
 0x16f   : > { %538 = vst [vmem:[%s1193_s19] sm:$0xff] %v522_v8 }
 0x176   : > { %v523_v9 = vpop.trf.xlu0 }
 0x177   : > { %539 = vst [vmem:[%s1193_s19 + $0x8] sm:$0xff] %v523_v9 }
 0x17e   : > { %v524_v10 = vpop.trf.xlu0 }
 0x17f   : > { %540 = vst [vmem:[%s1193_s19 + $0x10] sm:$0xff] %v524_v10 }
 0x186   : > { %v525_v11 = vpop.trf.xlu0 }
 0x187   : > { %541 = vst [vmem:[%s1193_s19 + $0x18] sm:$0xff] %v525_v11 }
 0x18e   : > { %v526_v12 = vpop.trf.xlu0 }
 0x18f   : > { %542 = vst [vmem:[%s1193_s19 + $0x20] sm:$0xff] %v526_v12 }
 0x196   : > { %v527_v13 = vpop.trf.xlu0 }
 0x197   : > { %543 = vst [vmem:[%s1193_s19 + $0x28] sm:$0xff] %v527_v13 }
 0x19e   : > { %v528_v14 = vpop.trf.xlu0 }
 0x19f   : > { %544 = vst [vmem:[%s1193_s19 + $0x30] sm:$0xff] %v528_v14 }
 0x1a6   : > { %v529_v15 = vpop.trf.xlu0 }
 0x1a7   : > { %545 = vst [vmem:[%s1193_s19 + $0x38] sm:$0xff] %v529_v15 }
 0x1ae   : > { %v530_v16 = vpop.trf.xlu0 }
 0x1af   : > { %546 = vst [vmem:[%s1193_s19 + $0x40] sm:$0xff] %v530_v16 }
 0x1b6   : > { %v531_v17 = vpop.trf.xlu0 }
 0x1b7   : > { %547 = vst [vmem:[%s1193_s19 + $0x48] sm:$0xff] %v531_v17 }
 0x1be   : > { %v532_v18 = vpop.trf.xlu0 }
 0x1bf   : > { %548 = vst [vmem:[%s1193_s19 + $0x50] sm:$0xff] %v532_v18 }
 0x1c6   : > { %v533_v19 = vpop.trf.xlu0 }
 0x1c7   : > { %549 = vst [vmem:[%s1193_s19 + $0x58] sm:$0xff] %v533_v19 }
 0x1ce   : > { %v534_v20 = vpop.trf.xlu0 }
 0x1cf   : > { %550 = vst [vmem:[%s1193_s19 + $0x60] sm:$0xff] %v534_v20 }
 0x1d6   : > { %v535_v21 = vpop.trf.xlu0 }
 0x1d7   : > { %551 = vst [vmem:[%s1193_s19 + $0x68] sm:$0xff] %v535_v21 }
 0x1de   : > { %v536_v22 = vpop.trf.xlu0 }
 0x1df   : > { %552 = vst [vmem:[%s1193_s19 + $0x70] sm:$0xff] %v536_v22 }
 0x1e6   : > { %v537_v23 = vpop.trf.xlu0 }
 0x1e7   : > { %553 = vst [vmem:[%s1193_s19 + $0x78] sm:$0xff] %v537_v23 }
 0x1e8   : > { %988 = shalt.err (!%p985_p0)
}
 0x1e9   : > { %s1054_s30 = smov 128   ;;  %s1055_s7 = smov 8  }
 0x1ea   : > { %828 = dma.vmem_to_hbm [thread:$0]  (%p1150_p5), %s569_s21, 2048, %s571_s22, %s555_s23, %s1054_s30, %s1054_s30, %s1055_s7  }
 0x1eb PF: > { %s585_s15 = sand.u32 1, %s1027_s9   ;;  %p839_p3 = pnand %p671_p11, %p1120_p6 }
 0x1ec   : > { %s586_s17 = scalar_lea.sflag [#allocation4], %s585_s15 }
 0x1ed   : > { %p840_p7 = pneg %p839_p3 }
 0x1ef   : > { %1022 = dma.done.wait (%p840_p7), %s586_s17, 2048  }
 0x1f0   : > { %1024 = vsyncadd (%p840_p7), %s586_s17, 4294965248  ;;  %s19_s14 = sadd.s32 1, %s1047_s14   ;;  %s1260_s9 = smov %s1031_s10 }
 0x1f1   : > { %p16_p9 = scmp.ge.s32.totalorder %s19_s14, 4   ;;  %s1261_s10 = smov %s1035_s11 }
 0x1f2   : > { %s1262_s11 = smov %s1159_s8  ;;  %s1263_s12 = smov %s1043_s13 }
 0x1f3   : > { %s1264_s13 = smov %s1266_s29  ;;  %18 = sbr.rel (!%p16_p9) target bundleno = 7 (0x7), region = 77 }
 0x1f8   :  { %592 = vsyncpa [#allocation3], 1 }
 0x1f9   :  { %594 = vsyncpa [#allocation3 + $0x1], 1 }
 0x1fa   :  { %595 = vsyncpa [#allocation6], 1 }
 0x1fb   :  { %596 = vsyncpa [#allocation4], 1 }
 0x1fc   :  { %598 = vsyncpa [#allocation4 + $0x1], 1 }

</bundles_post_ra>
